<compile_context>
chip_gen: v5e
topology: v5e:2x2
jax: 0.10.0
libtpu: 0.0.40
codegen_flags: <defaults>
</compile_context>

<pallas_src>
import functools

import jax
import jax.numpy as jnp
from jax.experimental import pallas as pl
from jax.experimental.pallas import tpu as pltpu


# ---------------------------- Pallas kernel ----------------------------

def _eca1d_kernel(w_ref, x_ref, o_ref, *, k_size):
    # w_ref: (k,) Conv1d taps in SMEM.  x_ref / o_ref: (B, N, C) VMEM refs (whole tensor resident).
    b, n, c = x_ref.shape
    pad = (k_size - 1) // 2

    # Lane index, built once (hoisted out of all loops) for the conv edge masks.
    lane = jax.lax.broadcasted_iota(jnp.int32, (1, c), 1)         # (1, C)

    for bi in range(b):                                           # static, tiny batch loop
        xb = x_ref[bi].astype(jnp.float32)                        # (N, C)

        # AdaptiveAvgPool1d(1): per-channel mean over the token axis (sublane reduction).
        m = jnp.mean(xb, axis=0, keepdims=True)                   # (1, C)

        # Conv1d(1, 1, k, padding=(k-1)//2, bias=False) across channels:
        #   z[co] = sum_j w[j] * m[co + j - pad]   (zero-padded outside [0, C)).
        # Each tap is a static XLU lane-rotation of m; wrapped lanes are masked to zero.
        z = jnp.zeros((1, c), jnp.float32)
        for j in range(k_size):                                   # static, k_size is tiny (3)
            s = pad - j                                           # roll(m, s)[co] == m[co - s] == m[co + j - pad]
            sh = m if (s % c) == 0 else pltpu.roll(m, shift=s % c, axis=1)
            if s > 0:                                             # left edge: co < s would wrap -> zero
                sh = jnp.where(lane >= s, sh, 0.0)
            elif s < 0:                                           # right edge: co >= C + s would wrap -> zero
                sh = jnp.where(lane < c + s, sh, 0.0)
            z = z + w_ref[j] * sh                                 # SMEM scalar tap * (1, C) vector

        # Sigmoid gate, exact f32 (exp on the EUP + one divide on a (1, C) vector).
        g = 1.0 / (1.0 + jnp.exp(-z))                             # (1, C)

        # Gate every token; lane-dense store of the full (N, C) slab for this batch item.
        o_ref[bi] = (xb * g).astype(o_ref.dtype)


# ---------------------------- wrapper ----------------------------

def eca_layer_1d(x, conv_w):
    """x: (B, N, C) float; conv_w: PyTorch Conv1d weight of shape (1, 1, k) (bias=False)."""
    B, N, C = x.shape
    w = conv_w.reshape(-1).astype(jnp.float32)                    # (k,) taps
    k_size = int(w.shape[0])
    kern = functools.partial(_eca1d_kernel, k_size=k_size)
    # Whole problem is tiny (B*N*C*4 B each way), so: no grid, whole tensor VMEM-resident.
    # For large inputs, reintroduce grid=(B // Bb,) with (Bb, N, C) blocks sized to VMEM
    # (budget ~4x block bytes for double-buffered in+out; v7x has 64 MiB VMEM, not 128 MiB).
    return pl.pallas_call(
        kern,
        out_shape=jax.ShapeDtypeStruct((B, N, C), x.dtype),
        in_specs=[
            pl.BlockSpec(memory_space=pltpu.MemorySpace.SMEM),    # conv taps as SMEM scalars
            pl.BlockSpec(memory_space=pltpu.MemorySpace.VMEM),    # full (B, N, C) in VMEM
        ],
        out_specs=pl.BlockSpec(memory_space=pltpu.MemorySpace.VMEM),
    )(w, x)


# ---------------------------- pure-JAX reference (for self-check) ----------------------------

def _reference(x, conv_w):
    w = conv_w.reshape(-1)
    k = w.shape[0]
    pad = (k - 1) // 2
    C = x.shape[-1]
    m = x.mean(axis=1)                                            # (B, C)
    mp = jnp.pad(m, ((0, 0), (pad, pad)))
    z = sum(w[j] * mp[:, j:j + C] for j in range(k))              # (B, C)
    return x * jax.nn.sigmoid(z)[:, None, :]


# ---------------------------- main ----------------------------

if __name__ == "__main__":
    # x: (batch, tokens, channels).  C = 128 keeps every load/store lane-dense; k_size = 3 (module default).
    B, N, C = 2, 64, 128
    key = jax.random.PRNGKey(0)
    kx, kw = jax.random.split(key)
    x = jax.random.normal(kx, (B, N, C), jnp.float32)
    conv_w = (0.5 * jax.random.normal(kw, (1, 1, 3))).astype(jnp.float32)   # Conv1d(1,1,3,bias=False)

    out = jax.jit(eca_layer_1d)(x, conv_w)
    jax.block_until_ready(out)

    ref = _reference(x, conv_w)
    assert out.shape == (B, N, C)
    err = float(jnp.max(jnp.abs(out - ref)))
    # Exact f32 path end to end (no MXU, no approx ops); shift/mask/tap-order bugs give errors >= 1e-1.
    assert err < 1e-4, f"mismatch vs pure-JAX reference: max abs err = {err}"
    print("KERNEL_OK")
</pallas_src>

<mosaic_0001>
module attributes {stable_mosaic.version = 11 : i64} {
  func.func @_eca1d_kernel(%arg0: memref<3xf32, #tpu.memory_space<smem>>, %arg1: memref<2x64x128xf32, #tpu.memory_space<vmem>>, %arg2: memref<2x64x128xf32, #tpu.memory_space<vmem>>) attributes {dimension_semantics = [], scalar_prefetch = 0 : i64, scratch_operands = 0 : i64, tpu.core_type = #tpu.core_type<tc>} {
    %0 = tpu.iota {dimensions = array<i32: 1>} : vector<1x128xi32>
    %c0 = arith.constant 0 : index
    %c0_0 = arith.constant 0 : index
    %c0_1 = arith.constant 0 : index
    %1 = vector.load %arg1[%c0, %c0_0, %c0_1] : memref<2x64x128xf32, #tpu.memory_space<vmem>>, vector<1x64x128xf32>
    %2 = vector.shape_cast %1 : vector<1x64x128xf32> to vector<64x128xf32>
    %cst = arith.constant dense<0.000000e+00> : vector<128xf32>
    %3 = vector.multi_reduction <add>, %2, %cst [0] : vector<64x128xf32> to vector<128xf32>
    %4 = vector.shape_cast %3 : vector<128xf32> to vector<1x128xf32>
    %cst_2 = arith.constant 6.400000e+01 : f32
    %5 = vector.broadcast %cst_2 : f32 to vector<1x128xf32>
    %6 = arith.divf %4, %5 : vector<1x128xf32>
    %cst_3 = arith.constant 0.000000e+00 : f32
    %7 = vector.broadcast %cst_3 : f32 to vector<1x128xf32>
    %c1_i32 = arith.constant 1 : i32
    %8 = tpu.dynamic_rotate %6 by %c1_i32 dim 1 : vector<1x128xf32>, i32 -> vector<1x128xf32>
    %c1_i32_4 = arith.constant 1 : i32
    %9 = vector.broadcast %c1_i32_4 : i32 to vector<1x128xi32>
    %10 = arith.cmpi sge, %0, %9 : vector<1x128xi32>
    %cst_5 = arith.constant 0.000000e+00 : f32
    %11 = vector.broadcast %cst_5 : f32 to vector<1x128xf32>
    %12 = arith.select %10, %8, %11 : vector<1x128xi1>, vector<1x128xf32>
    %c0_6 = arith.constant 0 : index
    %13 = memref.load %arg0[%c0_6] : memref<3xf32, #tpu.memory_space<smem>>
    %14 = vector.broadcast %13 : f32 to vector<1x128xf32>
    %15 = arith.mulf %14, %12 : vector<1x128xf32>
    %16 = arith.addf %7, %15 : vector<1x128xf32>
    %c1 = arith.constant 1 : index
    %17 = memref.load %arg0[%c1] : memref<3xf32, #tpu.memory_space<smem>>
    %18 = vector.broadcast %17 : f32 to vector<1x128xf32>
    %19 = arith.mulf %18, %6 : vector<1x128xf32>
    %20 = arith.addf %16, %19 : vector<1x128xf32>
    %c127_i32 = arith.constant 127 : i32
    %21 = tpu.dynamic_rotate %6 by %c127_i32 dim 1 : vector<1x128xf32>, i32 -> vector<1x128xf32>
    %c127_i32_7 = arith.constant 127 : i32
    %22 = vector.broadcast %c127_i32_7 : i32 to vector<1x128xi32>
    %23 = arith.cmpi slt, %0, %22 : vector<1x128xi32>
    %cst_8 = arith.constant 0.000000e+00 : f32
    %24 = vector.broadcast %cst_8 : f32 to vector<1x128xf32>
    %25 = arith.select %23, %21, %24 : vector<1x128xi1>, vector<1x128xf32>
    %c2 = arith.constant 2 : index
    %26 = memref.load %arg0[%c2] : memref<3xf32, #tpu.memory_space<smem>>
    %27 = vector.broadcast %26 : f32 to vector<1x128xf32>
    %28 = arith.mulf %27, %25 : vector<1x128xf32>
    %29 = arith.addf %20, %28 : vector<1x128xf32>
    %cst_9 = arith.constant 0.000000e+00 : f32
    %30 = vector.broadcast %cst_9 : f32 to vector<1x128xf32>
    %31 = arith.subf %30, %29 : vector<1x128xf32>
    %32 = math.exp %31 : vector<1x128xf32>
    %cst_10 = arith.constant 1.000000e+00 : f32
    %33 = vector.broadcast %cst_10 : f32 to vector<1x128xf32>
    %34 = arith.addf %33, %32 : vector<1x128xf32>
    %cst_11 = arith.constant 1.000000e+00 : f32
    %35 = vector.broadcast %cst_11 : f32 to vector<1x128xf32>
    %36 = arith.divf %35, %34 : vector<1x128xf32>
    %37 = vector.broadcast %36 : vector<1x128xf32> to vector<64x128xf32>
    %38 = arith.mulf %2, %37 : vector<64x128xf32>
    %c0_12 = arith.constant 0 : index
    %c0_13 = arith.constant 0 : index
    %c0_14 = arith.constant 0 : index
    %39 = vector.load %arg2[%c0_12, %c0_13, %c0_14] : memref<2x64x128xf32, #tpu.memory_space<vmem>>, vector<1x64x128xf32>
    %40 = vector.shape_cast %39 : vector<1x64x128xf32> to vector<64x128xf32>
    %41 = vector.shape_cast %38 : vector<64x128xf32> to vector<1x64x128xf32>
    tpu.vector_store %arg2[%c0_12, %c0_13, %c0_14], %41 {strides = array<i32>} : memref<2x64x128xf32, #tpu.memory_space<vmem>>, vector<1x64x128xf32>,
    %c1_15 = arith.constant 1 : index
    %c0_16 = arith.constant 0 : index
    %c0_17 = arith.constant 0 : index
    %42 = vector.load %arg1[%c1_15, %c0_16, %c0_17] : memref<2x64x128xf32, #tpu.memory_space<vmem>>, vector<1x64x128xf32>
    %43 = vector.shape_cast %42 : vector<1x64x128xf32> to vector<64x128xf32>
    %cst_18 = arith.constant dense<0.000000e+00> : vector<128xf32>
    %44 = vector.multi_reduction <add>, %43, %cst_18 [0] : vector<64x128xf32> to vector<128xf32>
    %45 = vector.shape_cast %44 : vector<128xf32> to vector<1x128xf32>
    %cst_19 = arith.constant 6.400000e+01 : f32
    %46 = vector.broadcast %cst_19 : f32 to vector<1x128xf32>
    %47 = arith.divf %45, %46 : vector<1x128xf32>
    %cst_20 = arith.constant 0.000000e+00 : f32
    %48 = vector.broadcast %cst_20 : f32 to vector<1x128xf32>
    %c1_i32_21 = arith.constant 1 : i32
    %49 = tpu.dynamic_rotate %47 by %c1_i32_21 dim 1 : vector<1x128xf32>, i32 -> vector<1x128xf32>
    %c1_i32_22 = arith.constant 1 : i32
    %50 = vector.broadcast %c1_i32_22 : i32 to vector<1x128xi32>
    %51 = arith.cmpi sge, %0, %50 : vector<1x128xi32>
    %cst_23 = arith.constant 0.000000e+00 : f32
    %52 = vector.broadcast %cst_23 : f32 to vector<1x128xf32>
    %53 = arith.select %51, %49, %52 : vector<1x128xi1>, vector<1x128xf32>
    %c0_24 = arith.constant 0 : index
    %54 = memref.load %arg0[%c0_24] : memref<3xf32, #tpu.memory_space<smem>>
    %55 = vector.broadcast %54 : f32 to vector<1x128xf32>
    %56 = arith.mulf %55, %53 : vector<1x128xf32>
    %57 = arith.addf %48, %56 : vector<1x128xf32>
    %c1_25 = arith.constant 1 : index
    %58 = memref.load %arg0[%c1_25] : memref<3xf32, #tpu.memory_space<smem>>
    %59 = vector.broadcast %58 : f32 to vector<1x128xf32>
    %60 = arith.mulf %59, %47 : vector<1x128xf32>
    %61 = arith.addf %57, %60 : vector<1x128xf32>
    %c127_i32_26 = arith.constant 127 : i32
    %62 = tpu.dynamic_rotate %47 by %c127_i32_26 dim 1 : vector<1x128xf32>, i32 -> vector<1x128xf32>
    %c127_i32_27 = arith.constant 127 : i32
    %63 = vector.broadcast %c127_i32_27 : i32 to vector<1x128xi32>
    %64 = arith.cmpi slt, %0, %63 : vector<1x128xi32>
    %cst_28 = arith.constant 0.000000e+00 : f32
    %65 = vector.broadcast %cst_28 : f32 to vector<1x128xf32>
    %66 = arith.select %64, %62, %65 : vector<1x128xi1>, vector<1x128xf32>
    %c2_29 = arith.constant 2 : index
    %67 = memref.load %arg0[%c2_29] : memref<3xf32, #tpu.memory_space<smem>>
    %68 = vector.broadcast %67 : f32 to vector<1x128xf32>
    %69 = arith.mulf %68, %66 : vector<1x128xf32>
    %70 = arith.addf %61, %69 : vector<1x128xf32>
    %cst_30 = arith.constant 0.000000e+00 : f32
    %71 = vector.broadcast %cst_30 : f32 to vector<1x128xf32>
    %72 = arith.subf %71, %70 : vector<1x128xf32>
    %73 = math.exp %72 : vector<1x128xf32>
    %cst_31 = arith.constant 1.000000e+00 : f32
    %74 = vector.broadcast %cst_31 : f32 to vector<1x128xf32>
    %75 = arith.addf %74, %73 : vector<1x128xf32>
    %cst_32 = arith.constant 1.000000e+00 : f32
    %76 = vector.broadcast %cst_32 : f32 to vector<1x128xf32>
    %77 = arith.divf %76, %75 : vector<1x128xf32>
    %78 = vector.broadcast %77 : vector<1x128xf32> to vector<64x128xf32>
    %79 = arith.mulf %43, %78 : vector<64x128xf32>
    %c1_33 = arith.constant 1 : index
    %c0_34 = arith.constant 0 : index
    %c0_35 = arith.constant 0 : index
    %80 = vector.load %arg2[%c1_33, %c0_34, %c0_35] : memref<2x64x128xf32, #tpu.memory_space<vmem>>, vector<1x64x128xf32>
    %81 = vector.shape_cast %80 : vector<1x64x128xf32> to vector<64x128xf32>
    %82 = vector.shape_cast %79 : vector<64x128xf32> to vector<1x64x128xf32>
    tpu.vector_store %arg2[%c1_33, %c0_34, %c0_35], %82 {strides = array<i32>} : memref<2x64x128xf32, #tpu.memory_space<vmem>>, vector<1x64x128xf32>,
    return
  }
}

</mosaic_0001>

<bundles_post_ra>
// kernel: eca_layer_1d.1
= control target key start
LH: loop header
LB: loop body
LE: loop exit
PB: predicated region body
PF: predicated region fallthrough
CT: control target
= control target key end

     0   :  { %7 = vsyncpa [#allocation5], 0  ;;  %s420_s0 = inlined_call_operand.vmem [shape: f32[3], index: 0, kind: input, shape index: {}]   ;;  %s421_s1 = inlined_call_operand.hbm [shape: f32[2,64,128], index: 1, kind: input, shape index: {}]   ;;  %s422_s2 = inlined_call_operand.hbm [shape: f32[2,64,128], index: 2, kind: output, shape index: {}]  }
   0x1   :  { %8 = vsyncpa [#allocation3], 0 }
   0x2   :  { %9 = vsyncpa [#allocation4], 0  ;;  %s15_s11 = sshll.u32 %s420_s0, 4  ;;  %s23_s14 = sshll.u32 %s421_s1, 4  ;;  %s16_s11 = int_to_ptr.vmem [resolvable:$true] %s15_s11  ;;  %s24_s14 = int_to_ptr.hbm [resolvable:$true] %s23_s14 }
   0x3   :  { %s314_s15 = smov [#allocation2]   ;;  %s315_s16 = smov [#allocation6]  }
   0x4   :  { %18 = dma.vmem_to_smem %s16_s11, 16, %s314_s15, [#allocation5]  }
   0x5   :  { %s25_s17 = sshll.u32 %s315_s16, 4  ;;  %s316_s18 = smov 128   ;;  %s26_s17 = int_to_ptr.vmem [resolvable:$true] %s25_s17 }
   0x6   :  { %s317_s19 = smov 8  }
   0x7   :  { %31 = dma.hbm_to_vmem [thread:$0]  %s24_s14, 2048, %s26_s17, [#allocation3], %s316_s18, %s316_s18, %s317_s19  }
   0x8   :  { %308 = dma.done.wait [#allocation5], 16  }
   0x9   :  { %309 = vsyncadd [#allocation5], 4294967280 }
   0xa   :  { %310 = dma.done.wait [#allocation3], 2048  }
   0xb   :  { %311 = vsyncadd [#allocation3], 4294965248 }
   0xc   :  { %40 = sfence }
   0xd   :  { %v346_v0 = vld [vmem:[#allocation6] sm:$0xff]  ;;  %v348_v1 = vld [vmem:[#allocation6 + $0x8] sm:$0xff]  ;;  %v350_v2 = vld [vmem:[#allocation6 + $0x10] sm:$0xff]  ;;  %v318_v4 = vmov 64.0   ;;  %s319_s0 = smov 1   ;;  %s320_s1 = smov 127   ;;  %v41_v51 = vlaneseq }
   0xe   :  { %v51_v3 = vadd.f32 %v348_v1, %v346_v0  ;;  %238 = vrcp.f32 %v318_v4  ;;  %v354_v5 = vld [vmem:[#allocation6 + $0x18] sm:$0xff]  ;;  %v356_v6 = vld [vmem:[#allocation6 + $0x40] sm:$0xff]  ;;  %v359_v8 = vld [vmem:[#allocation6 + $0x48] sm:$0xff]  ;;  %s226_s20 = sld [smem:[#allocation2 + $0x1]]  ;;  %s321_s23 = smov [#allocation7]  }
   0xf   :  { %v361_v9 = vld [vmem:[#allocation6 + $0x50] sm:$0xff]  ;;  %v363_v10 = vld [vmem:[#allocation6 + $0x20] sm:$0xff]  ;;  %v137_v11 = vadd.f32 %v359_v8, %v356_v6  ;;  %v368_v13 = vld [vmem:[#allocation6 + $0x58] sm:$0xff]  ;;  %s76_s21 = sld [smem:[#allocation2]]  ;;  %v42_v52 = vand.u32 127, %v41_v51  ;;  %s210_s24 = sshll.u32 %s321_s23, 4  ;;  %s211_s24 = int_to_ptr.vmem [resolvable:$true] %s210_s24 }
  0x10   :  { %v52_v7 = vadd.f32 %v51_v3, %v350_v2  ;;  %v370_v14 = vld [vmem:[#allocation6 + $0x28] sm:$0xff]  ;;  %v374_v18 = vld [vmem:[#allocation6 + $0x60] sm:$0xff]  ;;  %v376_v19 = vld [vmem:[#allocation6 + $0x30] sm:$0xff]  ;;  %s227_s22 = sld [smem:[#allocation2 + $0x2]]  ;;  %s212_s27 = sshll.u32 %s422_s2, 4  ;;  %s213_s27 = int_to_ptr.hbm [resolvable:$true] %s212_s27 }
  0x11   :  { %v138_v15 = vadd.f32 %v137_v11, %v361_v9  ;;  %v380_v23 = vld [vmem:[#allocation6 + $0x68] sm:$0xff]  ;;  %v382_v24 = vld [vmem:[#allocation6 + $0x38] sm:$0xff]  ;;  %v386_v27 = vld [vmem:[#allocation6 + $0x70] sm:$0xff]  ;;  %vm74_vm1 = vcmp.ge.s32.totalorder %v42_v52, 1  ;;  %vm86_vm2 = vcmp.lt.s32.totalorder %v42_v52, 127 }
  0x12   :  { %v53_v12 = vadd.f32 %v52_v7, %v354_v5  ;;  %v390_v31 = vld [vmem:[#allocation6 + $0x78] sm:$0xff] }
  0x13   :  { %v139_v21 = vadd.f32 %v138_v15, %v368_v13 }
  0x14   :  { %v239_v16 = vpop.eup %238  ;;  %v54_v17 = vadd.f32 %v53_v12, %v363_v10  ;;  %v81_v53 = vstv %s226_s20 }
  0x15   :  { %v65_v20 = vmul.f32 64.0, %v239_v16  ;;  %v140_v25 = vadd.f32 %v139_v21, %v374_v18  ;;  %vm69_vm0 = vweird.f32 %v239_v16  ;;  %v77_v54 = vstv %s76_s21 }
  0x16   :  { %v55_v22 = vadd.f32 %v54_v17, %v370_v14  ;;  %v89_v55 = vstv %s227_s22 }
  0x17   :  { %v66_v28 = vsub.f32 1.0, %v65_v20  ;;  %v141_v29 = vadd.f32 %v140_v25, %v380_v23 }
  0x18   :  { %v56_v26 = vadd.f32 %v55_v22, %v376_v19 }
  0x19   :  { %v142_v32 = vadd.f32 %v141_v29, %v386_v27  ;;  %v67_v34 = vmul.f32 %v239_v16, %v66_v28 }
  0x1a   :  { %v57_v30 = vadd.f32 %v56_v26, %v382_v24 }
  0x1b   :  { %v143_v35 = vadd.f32 %v142_v32, %v390_v31  ;;  %v68_v39 = vadd.f32 %v239_v16, %v67_v34 }
  0x1c   :  { %v58_v33 = vrot.slane %v57_v30, 4 }
  0x1d   :  { %v144_v37 = vrot.slane %v143_v35, 4  ;;  %v70_v44 = vsel %vm69_vm0, %v239_v16, %v68_v39 }
  0x1e   :  { %v59_v36 = vadd.f32 %v58_v33, %v57_v30 }
  0x1f   :  { %v145_v40 = vadd.f32 %v144_v37, %v143_v35 }
  0x20   :  { %v60_v38 = vrot.slane %v59_v36, 2 }
  0x21   :  { %v146_v42 = vrot.slane %v145_v40, 2 }
  0x22   :  { %v61_v41 = vadd.f32 %v60_v38, %v59_v36 }
  0x23   :  { %v147_v45 = vadd.f32 %v146_v42, %v145_v40 }
  0x24   :  { %v62_v43 = vrot.slane %v61_v41, 1 }
  0x25   :  { %v148_v47 = vrot.slane %v147_v45, 1 }
  0x26   :  { %v63_v46 = vadd.f32 %v62_v43, %v61_v41 }
  0x27   :  { %v149_v49 = vadd.f32 %v148_v47, %v147_v45 }
  0x28   :  { %v71_v48 = vmul.f32 %v70_v44, %v63_v46 }
  0x29   :  { %v150_v50 = vmul.f32 %v149_v49, %v70_v44 }
  0x2a   :  { %72 = vrot.lane.b32.xlu0 %v71_v48, %s319_s0  ;;  %84 = vrot.lane.b32.xlu1 %v71_v48, %s320_s1  ;;  %v82_v57 = vmul.f32 %v81_v53, %v71_v48 }
  0x2b   :  { %v160_v7 = vmul.f32 %v150_v50, %v81_v53 }
  0x32   :  { %151 = vrot.lane.b32.xlu0 %v150_v50, %s319_s0  ;;  %162 = vrot.lane.b32.xlu1 %v150_v50, %s320_s1 }
  0x9c   :  { %v73_v56 = vpop.permute.xlu0 %72  ;;  %v85_v58 = vpop.permute.xlu1 %84 }
  0x9d   :  { %v75_v59 = vsel %vm74_vm1, %v73_v56, 0.0  ;;  %v87_v60 = vsel %vm86_vm2, %v85_v58, 0.0 }
  0x9e   :  { %v78_v61 = vmul.f32 %v77_v54, %v75_v59  ;;  %v90_v62 = vmul.f32 %v89_v55, %v87_v60 }
  0xa0   :  { %v83_v63 = vadd.f32 %v82_v57, %v78_v61 }
  0xa2   :  { %v91_v3 = vadd.f32 %v90_v62, %v83_v63 }
  0xa4   :  { %v92_v4 = vsub.f32 0.0, %v91_v3  ;;  %v152_v11 = vpop.permute.xlu0 %151  ;;  %v163_v12 = vpop.permute.xlu1 %162 }
  0xa5   :  { %v153_v15 = vsel %vm74_vm1, %v152_v11, 0.0  ;;  %v164_v16 = vsel %vm86_vm2, %v163_v12, 0.0 }
  0xa6   :  { %v93_v17 = vmul.f32 1.442695, %v92_v4  ;;  %v156_v20 = vmul.f32 %v153_v15, %v77_v54  ;;  %v167_v21 = vmul.f32 %v164_v16, %v89_v55 }
  0xa8   :  { %240 = vpow2.f32 %v93_v17  ;;  %v161_v22 = vadd.f32 %v160_v7, %v156_v20 }
  0xaa   :  { %v168_v25 = vadd.f32 %v167_v21, %v161_v22 }
  0xac   :  { %v169_v26 = vsub.f32 0.0, %v168_v25 }
  0xae   :  { %v241_v28 = vpop.eup %240  ;;  %v170_v29 = vmul.f32 1.442695, %v169_v26 }
  0xaf   :  { %v95_v30 = vadd.f32 1.0, %v241_v28 }
  0xb0   :  { %242 = vpow2.f32 %v170_v29 }
  0xb1   :  { %244 = vrcp.f32 %v95_v30  ;;  %v107_v37 = vand.u32 2147483648, %v95_v30  ;;  %v105_v39 = vand.u32 2147483647, %v95_v30  ;;  %vm101_vm4 = vweird.f32 %v95_v30 }
  0xb3   :  { %v108_v42 = vor.u32 1.1754944e-38, %v107_v37  ;;  %vm106_vm6 = vcmp.eq.f32.partialorder %v105_v39, 8.507059e+37 }
  0xb6   :  { %v243_v32 = vpop.eup %242 }
  0xb7   :  { %v245_v33 = vpop.eup %244  ;;  %v172_v34 = vadd.f32 1.0, %v243_v32 }
  0xb8   :  { %v97_v35 = vmul.f32 %v245_v33, %v95_v30  ;;  %vm102_vm3 = vweird.f32 %v245_v33 }
  0xb9   :  { %246 = vrcp.f32 %v172_v34  ;;  %vm103_vm5 = vmor %vm101_vm4, %vm102_vm3  ;;  %v184_v52 = vand.u32 2147483648, %v172_v34  ;;  %v182_v55 = vand.u32 2147483647, %v172_v34  ;;  %vm178_vm8 = vweird.f32 %v172_v34 }
  0xba   :  { %v98_v36 = vsub.f32 1.0, %v97_v35 }
  0xbb   :  { %vm183_vm10 = vcmp.eq.f32.partialorder %v182_v55, 8.507059e+37 }
  0xbc   :  { %v99_v38 = vmul.f32 %v245_v33, %v98_v36 }
  0xbe   :  { %v100_v40 = vadd.f32 %v245_v33, %v99_v38 }
  0xbf   :  { %v247_v41 = vpop.eup %246 }
  0xc0   :  { %v104_v43 = vsel %vm103_vm5, %v245_v33, %v100_v40  ;;  %v174_v44 = vmul.f32 %v247_v41, %v172_v34  ;;  %vm179_vm7 = vweird.f32 %v247_v41 }
  0xc1   :  { %v109_v45 = vsel %vm106_vm6, %v108_v42, %v104_v43  ;;  %vm180_vm9 = vmor %vm178_vm8, %vm179_vm7 }
  0xc2   :  { %v111_v46 = vperm.slane %v109_v45, 0  ;;  %v175_v47 = vsub.f32 1.0, %v174_v44 }
  0xc4   :  { %v112_v48 = vmul.f32 %v111_v46, %v346_v0  ;;  %v113_v49 = vmul.f32 %v111_v46, %v348_v1  ;;  %v114_v50 = vmul.f32 %v111_v46, %v350_v2  ;;  %v115_v51 = vmul.f32 %v111_v46, %v354_v5 }
  0xc5   :  { %v116_v53 = vmul.f32 %v111_v46, %v363_v10  ;;  %v176_v54 = vmul.f32 %v247_v41, %v175_v47  ;;  %v117_v56 = vmul.f32 %v111_v46, %v370_v14  ;;  %v118_v57 = vmul.f32 %v111_v46, %v376_v19 }
  0xc6   :  { %120 = vst [vmem:[#allocation7] sm:$0xff] %v112_v48  ;;  %v119_v1 = vmul.f32 %v111_v46, %v382_v24  ;;  %v185_v2 = vor.u32 1.1754944e-38, %v184_v52 }
  0xc7   :  { %121 = vst [vmem:[#allocation7 + $0x8] sm:$0xff] %v113_v49  ;;  %v177_v0 = vadd.f32 %v247_v41, %v176_v54 }
  0xc8   :  { %122 = vst [vmem:[#allocation7 + $0x10] sm:$0xff] %v114_v50 }
  0xc9   :  { %123 = vst [vmem:[#allocation7 + $0x18] sm:$0xff] %v115_v51  ;;  %v181_v5 = vsel %vm180_vm9, %v247_v41, %v177_v0 }
  0xca   :  { %124 = vst [vmem:[#allocation7 + $0x20] sm:$0xff] %v116_v53  ;;  %v186_v10 = vsel %vm183_vm10, %v185_v2, %v181_v5 }
  0xcb   :  { %125 = vst [vmem:[#allocation7 + $0x28] sm:$0xff] %v117_v56  ;;  %v188_v58 = vperm.slane %v186_v10, 0 }
  0xcc   :  { %126 = vst [vmem:[#allocation7 + $0x30] sm:$0xff] %v118_v57 }
  0xcd   :  { %127 = vst [vmem:[#allocation7 + $0x38] sm:$0xff] %v119_v1  ;;  %v189_v14 = vmul.f32 %v188_v58, %v356_v6  ;;  %v190_v19 = vmul.f32 %v188_v58, %v359_v8  ;;  %v191_v59 = vmul.f32 %v188_v58, %v361_v9  ;;  %v192_v60 = vmul.f32 %v188_v58, %v368_v13 }
  0xce   :  { %v193_v24 = vmul.f32 %v188_v58, %v374_v18  ;;  %v194_v61 = vmul.f32 %v188_v58, %v380_v23  ;;  %v195_v62 = vmul.f32 %v188_v58, %v386_v27  ;;  %v196_v6 = vmul.f32 %v188_v58, %v390_v31 }
  0xcf   :  { %198 = vst [vmem:[#allocation7 + $0x40] sm:$0xff] %v189_v14 }
  0xd0   :  { %199 = vst [vmem:[#allocation7 + $0x48] sm:$0xff] %v190_v19 }
  0xd1   :  { %200 = vst [vmem:[#allocation7 + $0x50] sm:$0xff] %v191_v59 }
  0xd2   :  { %201 = vst [vmem:[#allocation7 + $0x58] sm:$0xff] %v192_v60 }
  0xd3   :  { %202 = vst [vmem:[#allocation7 + $0x60] sm:$0xff] %v193_v24 }
  0xd4   :  { %203 = vst [vmem:[#allocation7 + $0x68] sm:$0xff] %v194_v61 }
  0xd5   :  { %204 = vst [vmem:[#allocation7 + $0x70] sm:$0xff] %v195_v62 }
  0xd6   :  { %205 = vst [vmem:[#allocation7 + $0x78] sm:$0xff] %v196_v6 }
  0xd7   :  { %218 = dma.vmem_to_hbm [thread:$0]  %s211_s24, 2048, %s213_s27, [#allocation4], %s316_s18, %s316_s18, %s317_s19  }
  0xd8   :  { %312 = dma.done.wait [#allocation4], 2048  }
  0xd9   :  { %313 = vsyncadd [#allocation4], 4294965248 }
  0xda   :  { %223 = vsyncpa [#allocation3], 1 }
  0xdb   :  { %224 = vsyncpa [#allocation4], 1 }
  0xdc   :  { %225 = vsyncpa [#allocation5], 1 }

</bundles_post_ra>
